<compile_context>
chip_gen: v7x
topology: tpu7x:2x2x1
jax: 0.10.0
libtpu: 0.0.40
codegen_flags: <defaults>
</compile_context>

<pallas_src>
import functools

import jax
import jax.numpy as jnp
from jax.experimental import pallas as pl
from jax.experimental.pallas import tpu as pltpu


# ----------------------------------------------------------------------------- params
class Params:
    word_vocab_size = 128
    char_vocab_size = 32
    word_embed_size = 32
    char_embed_size = 16
    max_word_len = 8
    # (kernel_width, out_channels) for the char TDNN
    kernels = [(1, 8), (2, 8), (3, 16)]
    sum_depth = 8 + 8 + 16            # = 32
    encoder_rnn_size = 32
    encoder_num_layers = 1
    decoder_rnn_size = 32
    decoder_num_layers = 1
    latent_variable_size = 16


def _round_up(x, m):
    return ((x + m - 1) // m) * m


# ----------------------------------------------------------------------------- shared LSTM cell
def _lstm_cell(x, h, c, wih_ref, whh_ref, b_ref):
    """Fused gate matmuls + nonlinearities + state update.

    Gate columns are pre-ordered (i, f, o, g) so one sigmoid covers [:, :3H]
    and one tanh covers [:, 3H:].
    """
    gates = (jnp.dot(x, wih_ref[...], preferred_element_type=jnp.float32)
             + jnp.dot(h, whh_ref[...], preferred_element_type=jnp.float32)
             + b_ref[...])
    H = h.shape[-1]
    sig = jax.nn.sigmoid(gates[:, :3 * H])
    g = jnp.tanh(gates[:, 3 * H:])
    i = sig[:, :H]
    f = sig[:, H:2 * H]
    o = sig[:, 2 * H:3 * H]
    c_new = f * c + i * g
    h_new = o * jnp.tanh(c_new)
    return h_new, c_new


# ----------------------------------------------------------------------------- fused bi-LSTM encoder scan
def _bilstm_scan_kernel(xf_ref, xb_ref,
                        wih_f_ref, whh_f_ref, b_f_ref,
                        wih_b_ref, whh_b_ref, b_b_ref,
                        ctx_ref,
                        hf, cf, hb, cb):
    t = pl.program_id(0)

    @pl.when(t == 0)
    def _():
        hf[...] = jnp.zeros_like(hf)
        cf[...] = jnp.zeros_like(cf)
        hb[...] = jnp.zeros_like(hb)
        cb[...] = jnp.zeros_like(cb)

    # forward direction (xs[t]) and backward direction (xs[T-1-t]) in the same step
    h_f, c_f = _lstm_cell(xf_ref[0], hf[...], cf[...], wih_f_ref, whh_f_ref, b_f_ref)
    hf[...] = h_f
    cf[...] = c_f
    h_b, c_b = _lstm_cell(xb_ref[0], hb[...], cb[...], wih_b_ref, whh_b_ref, b_b_ref)
    hb[...] = h_b
    cb[...] = c_b

    @pl.when(t == pl.num_programs(0) - 1)
    def _():
        H = c_f.shape[-1]
        # kefirski RVAE uses the final *cell* states of both directions, concatenated.
        ctx_ref[:, :H] = c_f
        ctx_ref[:, H:] = c_b


def bidir_lstm_scan(xs, wih_f, whh_f, b_f, wih_b, whh_b, b_b):
    """xs: [T, Bp, I] time-major. Returns [cf | cb] of shape [Bp, 2H]."""
    T, Bp, I = xs.shape
    H = whh_f.shape[0]
    const = lambda t: (0, 0)
    return pl.pallas_call(
        _bilstm_scan_kernel,
        out_shape=jax.ShapeDtypeStruct((Bp, 2 * H), jnp.float32),
        grid_spec=pltpu.PrefetchScalarGridSpec(
            num_scalar_prefetch=0,
            grid=(T,),
            in_specs=[
                pl.BlockSpec((1, Bp, I), lambda t: (t, 0, 0)),          # forward time order
                pl.BlockSpec((1, Bp, I), lambda t: (T - 1 - t, 0, 0)),  # reversed time order
                pl.BlockSpec(wih_f.shape, const),                       # weights stay resident
                pl.BlockSpec(whh_f.shape, const),
                pl.BlockSpec(b_f.shape, const),
                pl.BlockSpec(wih_b.shape, const),
                pl.BlockSpec(whh_b.shape, const),
                pl.BlockSpec(b_b.shape, const),
            ],
            out_specs=pl.BlockSpec((Bp, 2 * H), const),
            scratch_shapes=[pltpu.VMEM((Bp, H), jnp.float32)] * 4,
        ),
        compiler_params=pltpu.CompilerParams(dimension_semantics=("arbitrary",)),
    )(xs, xs, wih_f, whh_f, b_f, wih_b, whh_b, b_b)


# ----------------------------------------------------------------------------- fused decoder scan + vocab projection
def _decoder_scan_kernel(x_ref, h0_ref, c0_ref,
                         wih_ref, whh_ref, b_ref, wfc_ref, bfc_ref,
                         logits_ref, hT_ref, cT_ref,
                         h_sc, c_sc):
    t = pl.program_id(0)

    @pl.when(t == 0)
    def _():
        h_sc[...] = h0_ref[...]
        c_sc[...] = c0_ref[...]

    h_new, c_new = _lstm_cell(x_ref[0], h_sc[...], c_sc[...], wih_ref, whh_ref, b_ref)
    h_sc[...] = h_new
    c_sc[...] = c_new

    # fused output projection: V = 128 -> lane-dense store of this timestep's logits
    logits_ref[0] = (jnp.dot(h_new, wfc_ref[...], preferred_element_type=jnp.float32)
                     + bfc_ref[...])

    @pl.when(t == pl.num_programs(0) - 1)
    def _():
        hT_ref[...] = h_new
        cT_ref[...] = c_new


def decoder_scan(xs, h0, c0, wih, whh, b, w_fc, b_fc):
    """xs: [T, Bp, Din]. Returns (logits [T,Bp,V], hT [Bp,H], cT [Bp,H])."""
    T, Bp, Din = xs.shape
    H = whh.shape[0]
    V = w_fc.shape[1]
    const = lambda t: (0, 0)
    return pl.pallas_call(
        _decoder_scan_kernel,
        out_shape=(
            jax.ShapeDtypeStruct((T, Bp, V), jnp.float32),
            jax.ShapeDtypeStruct((Bp, H), jnp.float32),
            jax.ShapeDtypeStruct((Bp, H), jnp.float32),
        ),
        grid_spec=pltpu.PrefetchScalarGridSpec(
            num_scalar_prefetch=0,
            grid=(T,),
            in_specs=[
                pl.BlockSpec((1, Bp, Din), lambda t: (t, 0, 0)),
                pl.BlockSpec((Bp, H), const),
                pl.BlockSpec((Bp, H), const),
                pl.BlockSpec(wih.shape, const),
                pl.BlockSpec(whh.shape, const),
                pl.BlockSpec(b.shape, const),
                pl.BlockSpec(w_fc.shape, const),
                pl.BlockSpec(b_fc.shape, const),
            ],
            out_specs=(
                pl.BlockSpec((1, Bp, V), lambda t: (t, 0, 0)),
                pl.BlockSpec((Bp, H), const),
                pl.BlockSpec((Bp, H), const),
            ),
            scratch_shapes=[pltpu.VMEM((Bp, H), jnp.float32)] * 2,
        ),
        compiler_params=pltpu.CompilerParams(dimension_semantics=("arbitrary",)),
    )(xs, h0, c0, wih, whh, b, w_fc, b_fc)


# ----------------------------------------------------------------------------- packed TDNN (conv + ReLU + max-over-time)
def _tdnn_kernel(x_ref, w_ref, b_ref, m_ref, o_ref, *, n_rows, t_out):
    # x: [T_out*N, Kmax] (time-major im2col), w: [Kmax, O], b: [1, O], m: [T_out, O]
    y = (jnp.dot(x_ref[...], w_ref[...], preferred_element_type=jnp.float32) + b_ref[...])
    y = jnp.maximum(y, 0.0)                                    # ReLU
    acc = None
    for t in range(t_out):                                     # static VPU max over time chunks
        yt = y[t * n_rows:(t + 1) * n_rows, :] * m_ref[t:t + 1, :]
        acc = yt if acc is None else jnp.maximum(acc, yt)
    o_ref[...] = acc


def tdnn_forward(cols2d, w_cat, b_cat, mask, n_rows):
    t_out = mask.shape[0]
    O = w_cat.shape[1]
    return pl.pallas_call(
        functools.partial(_tdnn_kernel, n_rows=n_rows, t_out=t_out),
        out_shape=jax.ShapeDtypeStruct((n_rows, O), jnp.float32),
    )(cols2d, w_cat, b_cat, mask)


# ----------------------------------------------------------------------------- fused latent path (mu/logvar/reparam/KLD)
def _latent_kernel(ctx_ref, w_ref, b_ref, eps_ref, z_ref, kld_ref, *, inv_n):
    y = (jnp.dot(ctx_ref[...], w_ref[...], preferred_element_type=jnp.float32) + b_ref[...])
    L = z_ref.shape[-1]
    mu = y[:, :L]
    logvar = y[:, L:]
    std = jnp.exp(0.5 * logvar)
    z_ref[...] = eps_ref[...] * std + mu
    per_ex = -0.5 * jnp.sum(logvar - mu * mu - jnp.exp(logvar) + 1.0, axis=1, keepdims=True)
    kld_ref[...] = jnp.sum(per_ex, axis=0, keepdims=True) * inv_n


def latent_forward(context, w_mulv, b_mulv, eps):
    B = context.shape[0]
    L = eps.shape[1]
    z, kld = pl.pallas_call(
        functools.partial(_latent_kernel, inv_n=1.0 / B),
        out_shape=(jax.ShapeDtypeStruct((B, L), jnp.float32),
                   jax.ShapeDtypeStruct((1, 1), jnp.float32)),
    )(context, w_mulv, b_mulv, eps)
    return z, kld[0, 0]


# ----------------------------------------------------------------------------- model pieces (glue)
def embedding_forward(p, kw_, word_input, char_input):
    we = kw_['word_embed'][word_input]                 # [B, S, Ew]   (gather - glue)
    ce = kw_['char_embed'][char_input]                 # [B, S, W, Ec]
    B, S, W, Ec = ce.shape
    N = B * S
    kw_max = max(k for k, _ in p.kernels)
    ce = ce.reshape(N, W, Ec)
    ce_pad = jnp.pad(ce, ((0, 0), (0, kw_max - 1), (0, 0)))
    # time-major im2col with kw_max-wide windows at every output position 0..W-1
    cols = jnp.stack(
        [ce_pad[:, t:t + kw_max, :].reshape(N, kw_max * Ec) for t in range(W)], axis=0)
    cols2d = cols.reshape(W * N, kw_max * Ec)          # [T_out*N, Kmax]
    td = tdnn_forward(cols2d, kw_['tdnn_w_cat'], kw_['tdnn_b_cat'], kw_['tdnn_mask'], N)
    td = td.reshape(B, S, p.sum_depth)                 # [B, S, sum_depth]
    return jnp.concatenate([we, td], axis=2)           # [B, S, Ew + sum_depth]


def encoder_forward(p, kw_, x):
    # x: [B, S, I] -> context [B, 2*encoder_rnn_size]
    B, S, _ = x.shape
    Bp = _round_up(B, 8)                               # pad batch to full f32 sublanes
    xs = jnp.transpose(x, (1, 0, 2))                   # [S, B, I] time-major
    xs = jnp.pad(xs, ((0, 0), (0, Bp - B), (0, 0)))
    ctx = bidir_lstm_scan(xs, kw_['enc_wih_f'], kw_['enc_whh_f'], kw_['enc_b_f'],
                          kw_['enc_wih_b'], kw_['enc_whh_b'], kw_['enc_b_b'])
    return ctx[:B]                                     # [B, 2H]


def decoder_forward(p, kw_, dec_embed, z, drop_prob, initial_state, drop_key=None):
    B, T, _ = dec_embed.shape
    H = p.decoder_rnn_size
    if drop_prob > 0.0:
        if drop_key is None:
            raise ValueError("drop_prob > 0 requires an rng key")
        keep = 1.0 - drop_prob
        mask = jax.random.bernoulli(drop_key, keep, dec_embed.shape)
        dec_embed = jnp.where(mask, dec_embed / keep, 0.0)   # F.dropout (training) semantics
    z_rep = jnp.broadcast_to(z[:, None, :], (B, T, z.shape[-1]))
    dec_in = jnp.concatenate([dec_embed, z_rep], axis=2)     # [B, T, Ew + L]
    Bp = _round_up(B, 8)
    xs = jnp.transpose(dec_in, (1, 0, 2))                    # [T, B, Ew+L]
    xs = jnp.pad(xs, ((0, 0), (0, Bp - B), (0, 0)))
    if initial_state is None:
        h0 = jnp.zeros((Bp, H), jnp.float32)
        c0 = jnp.zeros((Bp, H), jnp.float32)
    else:
        h0 = jnp.pad(initial_state[0][0], ((0, Bp - B), (0, 0)))
        c0 = jnp.pad(initial_state[1][0], ((0, Bp - B), (0, 0)))
    logits_tm, hT, cT = decoder_scan(xs, h0, c0, kw_['dec_wih'], kw_['dec_whh'], kw_['dec_b'],
                                     kw_['w_fc'], kw_['b_fc'])
    logits = jnp.transpose(logits_tm[:, :B, :], (1, 0, 2))   # [B, T, V]
    final_state = (hT[:B][None, :, :], cT[:B][None, :, :])   # [num_layers=1, B, H] each
    return logits, final_state


def rvae_forward(p, kw_, drop_prob, encoder_word_input=None, encoder_character_input=None,
                 decoder_word_input=None, decoder_character_input=None,
                 z=None, initial_state=None, rng=None):
    if z is None:
        B = encoder_word_input.shape[0]
        enc_in = embedding_forward(p, kw_, encoder_word_input, encoder_character_input)
        context = encoder_forward(p, kw_, enc_in)
        eps_key, drop_key = jax.random.split(rng)
        eps = jax.random.normal(eps_key, (B, p.latent_variable_size), jnp.float32)
        z, kld = latent_forward(context, kw_['w_mulv'], kw_['b_mulv'], eps)
    else:
        kld = None
        drop_key = rng
    dec_embed = kw_['word_embed'][decoder_word_input]        # [B, T, Ew]
    out, final_state = decoder_forward(p, kw_, dec_embed, z, drop_prob, initial_state, drop_key)
    return out, final_state, kld


# ----------------------------------------------------------------------------- weights
def init_weights(p, key):
    """PyTorch-layout weights (LSTM gate order i, f, g, o; per-width TDNN weights)."""
    keys = iter(jax.random.split(key, 32))

    def nrm(shape, scale=0.05):
        return (scale * jax.random.normal(next(keys), shape)).astype(jnp.float32)

    w = {}
    w['word_embed'] = nrm((p.word_vocab_size, p.word_embed_size))
    w['char_embed'] = nrm((p.char_vocab_size, p.char_embed_size))
    for idx, (k, oc) in enumerate(p.kernels):
        w[f'tdnn_w_{idx}'] = nrm((k * p.char_embed_size, oc))
        w[f'tdnn_b_{idx}'] = jnp.zeros((1, oc), jnp.float32)   # original TDNN conv has no bias
    enc_in = p.word_embed_size + p.sum_depth
    for d in ('f', 'b'):
        w[f'enc_wih_{d}'] = nrm((enc_in, 4 * p.encoder_rnn_size))
        w[f'enc_whh_{d}'] = nrm((p.encoder_rnn_size, 4 * p.encoder_rnn_size))
        w[f'enc_b_{d}'] = jnp.zeros((1, 4 * p.encoder_rnn_size), jnp.float32)
    ctx = 2 * p.encoder_rnn_size
    w['w_mu'] = nrm((ctx, p.latent_variable_size))
    w['b_mu'] = jnp.zeros((1, p.latent_variable_size), jnp.float32)
    w['w_lv'] = nrm((ctx, p.latent_variable_size))
    w['b_lv'] = jnp.zeros((1, p.latent_variable_size), jnp.float32)
    dec_in = p.word_embed_size + p.latent_variable_size
    w['dec_wih'] = nrm((dec_in, 4 * p.decoder_rnn_size))
    w['dec_whh'] = nrm((p.decoder_rnn_size, 4 * p.decoder_rnn_size))
    w['dec_b'] = jnp.zeros((1, 4 * p.decoder_rnn_size), jnp.float32)
    w['w_fc'] = nrm((p.decoder_rnn_size, p.word_vocab_size))
    w['b_fc'] = jnp.zeros((1, p.word_vocab_size), jnp.float32)
    return w


def _reorder_gates(m, H):
    # PyTorch nn.LSTM gate order (i, f, g, o) -> kernel order (i, f, o, g)
    return jnp.concatenate(
        [m[..., :H], m[..., H:2 * H], m[..., 3 * H:], m[..., 2 * H:3 * H]], axis=-1)


def prepare_weights(p, w):
    """Pack / reorder PyTorch-layout weights into the forms the fused kernels consume."""
    kw_ = {'word_embed': w['word_embed'], 'char_embed': w['char_embed']}

    # packed TDNN: one [kw_max*Ec, sum_depth] weight + per-width time-validity mask
    kw_max = max(k for k, _ in p.kernels)
    Kmax = kw_max * p.char_embed_size
    w_cat = jnp.zeros((Kmax, p.sum_depth), jnp.float32)
    b_cat = jnp.zeros((1, p.sum_depth), jnp.float32)
    mask = jnp.zeros((p.max_word_len, p.sum_depth), jnp.float32)
    col = 0
    for idx, (k, oc) in enumerate(p.kernels):
        w_cat = w_cat.at[:k * p.char_embed_size, col:col + oc].set(w[f'tdnn_w_{idx}'])
        b_cat = b_cat.at[:, col:col + oc].set(w[f'tdnn_b_{idx}'])
        mask = mask.at[:p.max_word_len - k + 1, col:col + oc].set(1.0)
        col += oc
    kw_['tdnn_w_cat'], kw_['tdnn_b_cat'], kw_['tdnn_mask'] = w_cat, b_cat, mask

    # encoder / decoder LSTM weights with gate columns reordered to (i, f, o, g)
    He, Hd = p.encoder_rnn_size, p.decoder_rnn_size
    for d in ('f', 'b'):
        kw_[f'enc_wih_{d}'] = _reorder_gates(w[f'enc_wih_{d}'], He)
        kw_[f'enc_whh_{d}'] = _reorder_gates(w[f'enc_whh_{d}'], He)
        kw_[f'enc_b_{d}'] = _reorder_gates(w[f'enc_b_{d}'], He)
    kw_['dec_wih'] = _reorder_gates(w['dec_wih'], Hd)
    kw_['dec_whh'] = _reorder_gates(w['dec_whh'], Hd)
    kw_['dec_b'] = _reorder_gates(w['dec_b'], Hd)

    # fused latent projection: [w_mu | w_lv]
    kw_['w_mulv'] = jnp.concatenate([w['w_mu'], w['w_lv']], axis=1)
    kw_['b_mulv'] = jnp.concatenate([w['b_mu'], w['b_lv']], axis=1)

    kw_['w_fc'], kw_['b_fc'] = w['w_fc'], w['b_fc']
    return kw_


# ----------------------------------------------------------------------------- main
if __name__ == "__main__":
    p = Params()
    master = jax.random.PRNGKey(0)
    k_w, k1, k2, k3, k_rng = jax.random.split(master, 5)
    weights = prepare_weights(p, init_weights(p, k_w))

    B, S_enc, S_dec = 2, 8, 8
    encoder_word_input = jax.random.randint(k1, (B, S_enc), 0, p.word_vocab_size)
    encoder_character_input = jax.random.randint(
        k2, (B, S_enc, p.max_word_len), 0, p.char_vocab_size)
    decoder_word_input = jax.random.randint(k3, (B, S_dec), 0, p.word_vocab_size)
    # decoder_character_input is unused by RVAE.forward (word embedding only), matching PyTorch.
    # TODO(synk): batch_loader-dependent trainer/validater/sample paths are host-side driver
    # code, not part of the forward pass, and are not translated.

    out, final_state, kld = rvae_forward(
        p, weights, 0.0,
        encoder_word_input=encoder_word_input,
        encoder_character_input=encoder_character_input,
        decoder_word_input=decoder_word_input,
        decoder_character_input=None,
        z=None, initial_state=None, rng=k_rng)

    jax.block_until_ready((out, final_state, kld))
    assert out.shape == (B, S_dec, p.word_vocab_size)
    assert final_state[0].shape == (1, B, p.decoder_rnn_size)
    assert final_state[1].shape == (1, B, p.decoder_rnn_size)
    assert kld.shape == ()
    print("KERNEL_OK")
</pallas_src>

<mosaic_0001>
module attributes {stable_mosaic.version = 11 : i64} {
  func.func @_tdnn_kernel(%arg0: memref<128x48xf32, #tpu.memory_space<vmem>>, %arg1: memref<48x32xf32, #tpu.memory_space<vmem>>, %arg2: memref<1x32xf32, #tpu.memory_space<vmem>>, %arg3: memref<8x32xf32, #tpu.memory_space<vmem>>, %arg4: memref<16x32xf32, #tpu.memory_space<vmem>>) attributes {dimension_semantics = [], scalar_prefetch = 0 : i64, scratch_operands = 0 : i64, tpu.core_type = #tpu.core_type<tc>} {
    %c0 = arith.constant 0 : index
    %c0_0 = arith.constant 0 : index
    %0 = vector.load %arg0[%c0, %c0_0] : memref<128x48xf32, #tpu.memory_space<vmem>>, vector<128x48xf32>
    %c0_1 = arith.constant 0 : index
    %c0_2 = arith.constant 0 : index
    %1 = vector.load %arg1[%c0_1, %c0_2] : memref<48x32xf32, #tpu.memory_space<vmem>>, vector<48x32xf32>
    %cst = arith.constant dense<0.000000e+00> : vector<128x32xf32>
    %2 = tpu.matmul %0, %1, %cst {dimension_numbers = #tpu.dot_dimension_numbers<[1], [0], [0], [1], [0, 0, 1, 1], [], []>} : vector<128x48xf32>, vector<48x32xf32>, vector<128x32xf32> -> vector<128x32xf32>
    %c0_3 = arith.constant 0 : index
    %c0_4 = arith.constant 0 : index
    %3 = vector.load %arg2[%c0_3, %c0_4] : memref<1x32xf32, #tpu.memory_space<vmem>>, vector<1x32xf32>
    %4 = vector.broadcast %3 : vector<1x32xf32> to vector<128x32xf32>
    %5 = arith.addf %2, %4 : vector<128x32xf32>
    %cst_5 = arith.constant 0.000000e+00 : f32
    %6 = vector.broadcast %cst_5 : f32 to vector<128x32xf32>
    %7 = arith.maximumf %5, %6 : vector<128x32xf32>
    %8 = vector.extract_strided_slice %7 {offsets = [0, 0], sizes = [16, 32], strides = [1, 1]} : vector<128x32xf32> to vector<16x32xf32>
    %c0_6 = arith.constant 0 : index
    %c0_7 = arith.constant 0 : index
    %9 = vector.load %arg3[%c0_6, %c0_7] : memref<8x32xf32, #tpu.memory_space<vmem>>, vector<1x32xf32>
    %10 = vector.broadcast %9 : vector<1x32xf32> to vector<16x32xf32>
    %11 = arith.mulf %8, %10 : vector<16x32xf32>
    %12 = vector.extract_strided_slice %7 {offsets = [16, 0], sizes = [16, 32], strides = [1, 1]} : vector<128x32xf32> to vector<16x32xf32>
    %c1 = arith.constant 1 : index
    %c0_8 = arith.constant 0 : index
    %13 = vector.load %arg3[%c1, %c0_8] : memref<8x32xf32, #tpu.memory_space<vmem>>, vector<1x32xf32>
    %14 = vector.broadcast %13 : vector<1x32xf32> to vector<16x32xf32>
    %15 = arith.mulf %12, %14 : vector<16x32xf32>
    %16 = arith.maximumf %11, %15 : vector<16x32xf32>
    %17 = vector.extract_strided_slice %7 {offsets = [32, 0], sizes = [16, 32], strides = [1, 1]} : vector<128x32xf32> to vector<16x32xf32>
    %c2 = arith.constant 2 : index
    %c0_9 = arith.constant 0 : index
    %18 = vector.load %arg3[%c2, %c0_9] : memref<8x32xf32, #tpu.memory_space<vmem>>, vector<1x32xf32>
    %19 = vector.broadcast %18 : vector<1x32xf32> to vector<16x32xf32>
    %20 = arith.mulf %17, %19 : vector<16x32xf32>
    %21 = arith.maximumf %16, %20 : vector<16x32xf32>
    %22 = vector.extract_strided_slice %7 {offsets = [48, 0], sizes = [16, 32], strides = [1, 1]} : vector<128x32xf32> to vector<16x32xf32>
    %c3 = arith.constant 3 : index
    %c0_10 = arith.constant 0 : index
    %23 = vector.load %arg3[%c3, %c0_10] : memref<8x32xf32, #tpu.memory_space<vmem>>, vector<1x32xf32>
    %24 = vector.broadcast %23 : vector<1x32xf32> to vector<16x32xf32>
    %25 = arith.mulf %22, %24 : vector<16x32xf32>
    %26 = arith.maximumf %21, %25 : vector<16x32xf32>
    %27 = vector.extract_strided_slice %7 {offsets = [64, 0], sizes = [16, 32], strides = [1, 1]} : vector<128x32xf32> to vector<16x32xf32>
    %c4 = arith.constant 4 : index
    %c0_11 = arith.constant 0 : index
    %28 = vector.load %arg3[%c4, %c0_11] : memref<8x32xf32, #tpu.memory_space<vmem>>, vector<1x32xf32>
    %29 = vector.broadcast %28 : vector<1x32xf32> to vector<16x32xf32>
    %30 = arith.mulf %27, %29 : vector<16x32xf32>
    %31 = arith.maximumf %26, %30 : vector<16x32xf32>
    %32 = vector.extract_strided_slice %7 {offsets = [80, 0], sizes = [16, 32], strides = [1, 1]} : vector<128x32xf32> to vector<16x32xf32>
    %c5 = arith.constant 5 : index
    %c0_12 = arith.constant 0 : index
    %33 = vector.load %arg3[%c5, %c0_12] : memref<8x32xf32, #tpu.memory_space<vmem>>, vector<1x32xf32>
    %34 = vector.broadcast %33 : vector<1x32xf32> to vector<16x32xf32>
    %35 = arith.mulf %32, %34 : vector<16x32xf32>
    %36 = arith.maximumf %31, %35 : vector<16x32xf32>
    %37 = vector.extract_strided_slice %7 {offsets = [96, 0], sizes = [16, 32], strides = [1, 1]} : vector<128x32xf32> to vector<16x32xf32>
    %c6 = arith.constant 6 : index
    %c0_13 = arith.constant 0 : index
    %38 = vector.load %arg3[%c6, %c0_13] : memref<8x32xf32, #tpu.memory_space<vmem>>, vector<1x32xf32>
    %39 = vector.broadcast %38 : vector<1x32xf32> to vector<16x32xf32>
    %40 = arith.mulf %37, %39 : vector<16x32xf32>
    %41 = arith.maximumf %36, %40 : vector<16x32xf32>
    %42 = vector.extract_strided_slice %7 {offsets = [112, 0], sizes = [16, 32], strides = [1, 1]} : vector<128x32xf32> to vector<16x32xf32>
    %c7 = arith.constant 7 : index
    %c0_14 = arith.constant 0 : index
    %43 = vector.load %arg3[%c7, %c0_14] : memref<8x32xf32, #tpu.memory_space<vmem>>, vector<1x32xf32>
    %44 = vector.broadcast %43 : vector<1x32xf32> to vector<16x32xf32>
    %45 = arith.mulf %42, %44 : vector<16x32xf32>
    %46 = arith.maximumf %41, %45 : vector<16x32xf32>
    %c0_15 = arith.constant 0 : index
    %c0_16 = arith.constant 0 : index
    %47 = vector.load %arg4[%c0_15, %c0_16] : memref<16x32xf32, #tpu.memory_space<vmem>>, vector<16x32xf32>
    tpu.vector_store %arg4[%c0_15, %c0_16], %46 {strides = array<i32>} : memref<16x32xf32, #tpu.memory_space<vmem>>, vector<16x32xf32>,
    return
  }
}

</mosaic_0001>

<bundles_post_ra>
// kernel: tpu_custom_call.1
= control target key start
LH: loop header
LB: loop body
LE: loop exit
PB: predicated region body
PF: predicated region fallthrough
CT: control target
= control target key end

     0   :  { %vm47_vm0 = vcmask 392192   ;;  %s623_s0 = inlined_call_operand.vmem [shape: f32[128,48], index: 0, kind: input, shape index: {}]   ;;  %s624_s1 = inlined_call_operand.vmem [shape: f32[48,32], index: 1, kind: input, shape index: {}]   ;;  %s625_s2 = inlined_call_operand.vmem [shape: f32[1,32], index: 2, kind: input, shape index: {}]   ;;  %s626_s3 = inlined_call_operand.vmem [shape: f32[8,32], index: 3, kind: input, shape index: {}]   ;;  %s627_s4 = inlined_call_operand.hbm [shape: f32[16,32], index: 4, kind: output, shape index: {}]  }
   0x1   :  { %v34_v0 = vld [vmem:[%s624_s1] sm:$0xff]  ;;  %v35_v1 = vld [vmem:[%s624_s1 + $0x8] sm:$0xff]  ;;  %v36_v2 = vld [vmem:[%s624_s1 + $0x10] sm:$0xff] }
   0x2   :  { %v429_v3 = vpack.c.bf16 %v35_v1, %v34_v0  ;;  %v37_v4 = vld [vmem:[%s624_s1 + $0x18] sm:$0xff]  ;;  %v38_v6 = vld [vmem:[%s624_s1 + $0x20] sm:$0xff]  ;;  %v39_v7 = vld [vmem:[%s624_s1 + $0x28] sm:$0xff] }
   0x3   :  { %v433_v5 = vpack.c.bf16 %v37_v4, %v36_v2  ;;  %v18_v8 = vld [vmem:[%s623_s0] sm:$0xff]  ;;  %v437_v10 = vpack.c.bf16 %v39_v7, %v38_v6 }
   0x4   :  { %430 = vmatprep.subr.bf16.mxu0 %v429_v3  ;;  %441 = vmatprep.subr.bf16.mxu1 %v429_v3  ;;  %v26_v9 = vld [vmem:[%s623_s0 + $0x40] sm:$0xff] }
   0x5   :  { %432 = vmatpush3.bf16.msra.mxu0 %v429_v3  ;;  %444 = vmatpush3.bf16.msra.mxu1 %v429_v3 }
   0x6   :  { %434 = vmatprep.subr.bf16.mxu0 %v433_v5  ;;  %442 = vmatprep.subr.bf16.mxu1 %v433_v5 }
   0x7   :  { %405 = vmatprep.mubr.msk.f32.mxu0 %vm47_vm0, %v18_v8  ;;  %417 = vmatprep.mubr.msk.f32.mxu1 %vm47_vm0, %v26_v9 }
   0x8   :  { %9 = vsyncpa [#allocation3], 0  ;;  %v19_v11 = vld [vmem:[%s623_s0 + $0x8] sm:$0xff]  ;;  %v20_v13 = vld [vmem:[%s623_s0 + $0x10] sm:$0xff]  ;;  %s474_s21 = smov [#allocation2]   ;;  %vm327_vm1 = vcmask 261120  }
   0x9   :  { %436 = vmatpush3.bf16.msra.mxu0 %v433_v5  ;;  %445 = vmatpush3.bf16.msra.mxu1 %v433_v5  ;;  %v27_v12 = vld [vmem:[%s623_s0 + $0x48] sm:$0xff]  ;;  %v28_v14 = vld [vmem:[%s623_s0 + $0x50] sm:$0xff]  ;;  %v21_v15 = vld [vmem:[%s623_s0 + $0x18] sm:$0xff]  ;;  %s335_s22 = sshll.u32 %s474_s21, 4  ;;  %s336_s22 = int_to_ptr.vmem [resolvable:$true] %s335_s22 }
   0xa   :  { %438 = vmatprep.subr.bf16.mxu0 %v437_v10  ;;  %443 = vmatprep.subr.bf16.mxu1 %v437_v10  ;;  %v29_v16 = vld [vmem:[%s623_s0 + $0x58] sm:$0xff]  ;;  %v22_v17 = vld [vmem:[%s623_s0 + $0x20] sm:$0xff]  ;;  %v23_v19 = vld [vmem:[%s623_s0 + $0x28] sm:$0xff]  ;;  %p455_p1 = scmp.lt.s32.totalorder %s336_s22, %s336_s22 }
   0xb   :  { %v30_v18 = vld [vmem:[%s623_s0 + $0x60] sm:$0xff]  ;;  %v31_v20 = vld [vmem:[%s623_s0 + $0x68] sm:$0xff]  ;;  %v24_v21 = vld [vmem:[%s623_s0 + $0x30] sm:$0xff] }
   0xc   :  { %v32_v22 = vld [vmem:[%s623_s0 + $0x70] sm:$0xff]  ;;  %v25_v23 = vld [vmem:[%s623_s0 + $0x38] sm:$0xff]  ;;  %v346_v25 = vld [vmem:[%s625_s2] ss:$0 sm:$0xff] }
   0xd   :  { %440 = vmatpush3.bf16.msra.mxu0 %v437_v10  ;;  %446 = vmatpush3.bf16.msra.mxu1 %v437_v10  ;;  %v33_v24 = vld [vmem:[%s623_s0 + $0x78] sm:$0xff]  ;;  %v363_v38 = vld [vmem:[%s626_s3] ss:$0 sm:$0xff]  ;;  %v364_v40 = vld [vmem:[%s626_s3 + $0x1] ss:$0 sm:$0xff] }
   0xe   :  { %v365_v54 = vld [vmem:[%s626_s3 + $0x2] ss:$0 sm:$0xff]  ;;  %v366_v7 = vld [vmem:[%s626_s3 + $0x3] ss:$0 sm:$0xff] }
  0x10   :  { %406 = vmatmul.mubr.msk.f32.vlgmr.msra.gmra.mrb[0].mxu0 %vm47_vm0, %v19_v11  ;;  %418 = vmatmul.mubr.msk.f32.vlgmr.msra.gmra.mrb[0].mxu1 %vm47_vm0, %v27_v12 }
  0x11   :  { %408 = vmatprep.mubr.msk.f32.mxu0 %vm47_vm0, %v20_v13  ;;  %420 = vmatprep.mubr.msk.f32.mxu1 %vm47_vm0, %v28_v14  ;;  %v367_v14 = vld [vmem:[%s626_s3 + $0x4] ss:$0 sm:$0xff] }
  0x14   :  { %409 = vmatmul.mubr.msk.f32.gmra.mrb[2].mxu0 %vm47_vm0, %v21_v15  ;;  %421 = vmatmul.mubr.msk.f32.gmra.mrb[2].mxu1 %vm47_vm0, %v29_v16 }
  0x15   :  { %411 = vmatprep.mubr.msk.f32.mxu0 %vm47_vm0, %v22_v17  ;;  %423 = vmatprep.mubr.msk.f32.mxu1 %vm47_vm0, %v30_v18 }
  0x18   :  { %412 = vmatmul.mubr.msk.f32.gmra.mrb[4].mxu0 %vm47_vm0, %v23_v19  ;;  %424 = vmatmul.mubr.msk.f32.gmra.mrb[4].mxu1 %vm47_vm0, %v31_v20 }
  0x19   :  { %414 = vmatprep.mubr.msk.f32.mxu0 %vm47_vm0, %v24_v21  ;;  %426 = vmatprep.mubr.msk.f32.mxu1 %vm47_vm0, %v32_v22  ;;  %v368_v21 = vld [vmem:[%s626_s3 + $0x5] ss:$0 sm:$0xff] }
  0x1c   :  { %415 = vmatmul.mubr.msk.f32.gmra.mrb[6].mxu0 %vm47_vm0, %v25_v23  ;;  %427 = vmatmul.mubr.msk.f32.gmra.mrb[6].mxu1 %vm47_vm0, %v33_v24 }
  0xe3   :  { %v407_v26 = vpop.f32.mrb[0].mxu0  ;;  %v419_v27 = vpop.f32.mrb[0].mxu1 }
  0xe4   :  { %v168_v28 = vadd.f32 %v407_v26, %v346_v25  ;;  %v162_v29 = vpop.f32.mrb[1].mxu0  ;;  %v202_v30 = vpop.f32.mrb[1].mxu1  ;;  %v208_v48 = vadd.f32 %v419_v27, %v346_v25 }
  0xe5   :  { %v163_v31 = vadd.f32 %v346_v25, %v162_v29  ;;  %v203_v55 = vadd.f32 %v346_v25, %v202_v30 }
  0xe6   :  { %v242_v34 = vmax.f32 %v168_v28, 0.0  ;;  %v250_v63 = vmax.f32 %v208_v48, 0.0 }
  0xe7   :  { %v410_v32 = vpop.f32.mrb[2].mxu0  ;;  %v422_v33 = vpop.f32.mrb[2].mxu1  ;;  %v241_v39 = vmax.f32 %v163_v31, 0.0  ;;  %v249_v5 = vmax.f32 %v203_v55, 0.0  ;;  %v369_v31 = vld [vmem:[%s626_s3 + $0x6] ss:$0 sm:$0xff] }
  0xe8   :  { %v178_v35 = vadd.f32 %v410_v32, %v346_v25  ;;  %v172_v36 = vpop.f32.mrb[3].mxu0  ;;  %v212_v37 = vpop.f32.mrb[3].mxu1  ;;  %v263_v46 = vmul.f32 %v363_v38, %v242_v34  ;;  %v218_v1 = vadd.f32 %v422_v33, %v346_v25  ;;  %v297_v24 = vmul.f32 %v367_v14, %v250_v63 }
  0xe9   :  { %v173_v41 = vadd.f32 %v346_v25, %v172_v36  ;;  %v262_v52 = vmul.f32 %v363_v38, %v241_v39  ;;  %v213_v8 = vadd.f32 %v346_v25, %v212_v37  ;;  %v296_v29 = vmul.f32 %v367_v14, %v249_v5 }
  0xea   :  { %v244_v42 = vmax.f32 %v178_v35, 0.0  ;;  %v252_v19 = vmax.f32 %v218_v1, 0.0 }
  0xeb   :  { %v243_v43 = vmax.f32 %v173_v41, 0.0  ;;  %v413_v44 = vpop.f32.mrb[4].mxu0  ;;  %v425_v45 = vpop.f32.mrb[4].mxu1  ;;  %v251_v22 = vmax.f32 %v213_v8, 0.0 }
  0xec   :  { %v270_v47 = vmul.f32 %v364_v40, %v244_v42  ;;  %v188_v49 = vadd.f32 %v413_v44, %v346_v25  ;;  %v182_v50 = vpop.f32.mrb[5].mxu0  ;;  %v222_v51 = vpop.f32.mrb[5].mxu1  ;;  %v228_v12 = vadd.f32 %v425_v45, %v346_v25  ;;  %v306_v34 = vmul.f32 %v368_v21, %v252_v19 }
  0xed   :  { %v269_v53 = vmul.f32 %v364_v40, %v243_v43  ;;  %v183_v56 = vadd.f32 %v346_v25, %v182_v50  ;;  %v223_v17 = vadd.f32 %v346_v25, %v222_v51  ;;  %v305_v36 = vmul.f32 %v368_v21, %v251_v22 }
  0xee   :  { %v272_v57 = vmax.f32 %v263_v46, %v270_v47  ;;  %v246_v58 = vmax.f32 %v188_v49, 0.0  ;;  %v254_v27 = vmax.f32 %v228_v12, 0.0 }
  0xef   :  { %v271_v59 = vmax.f32 %v262_v52, %v269_v53  ;;  %v245_v60 = vmax.f32 %v183_v56, 0.0  ;;  %v416_v61 = vpop.f32.mrb[6].mxu0  ;;  %v428_v62 = vpop.f32.mrb[6].mxu1  ;;  %v253_v32 = vmax.f32 %v223_v17, 0.0 }
  0xf0   :  { %v279_v0 = vmul.f32 %v365_v54, %v246_v58  ;;  %v198_v2 = vadd.f32 %v416_v61, %v346_v25  ;;  %v192_v3 = vpop.f32.mrb[7].mxu0  ;;  %v232_v4 = vpop.f32.mrb[7].mxu1  ;;  %v238_v13 = vadd.f32 %v428_v62, %v346_v25  ;;  %v315_v39 = vmul.f32 %v369_v31, %v254_v27 }
  0xf1   :  { %v278_v6 = vmul.f32 %v365_v54, %v245_v60  ;;  %v193_v9 = vadd.f32 %v346_v25, %v192_v3  ;;  %v233_v18 = vadd.f32 %v346_v25, %v232_v4  ;;  %v370_v25 = vld [vmem:[%s626_s3 + $0x7] ss:$0 sm:$0xff]  ;;  %v314_v42 = vmul.f32 %v369_v31, %v253_v32  ;;  %s450_s3 = scalar_lea.vmem %s336_s22, 256 }
  0xf2   :  { %v281_v10 = vmax.f32 %v272_v57, %v279_v0  ;;  %v248_v11 = vmax.f32 %v198_v2, 0.0  ;;  %v256_v28 = vmax.f32 %v238_v13, 0.0  ;;  %p451_p0 = scmp.ne.s32.totalorder %s336_s22, %s450_s3  ;;  %p456_p2 = scmp.lt.s32.totalorder %s450_s3, %s450_s3 }
  0xf3   :  { %v280_v15 = vmax.f32 %v271_v59, %v278_v6  ;;  %v247_v16 = vmax.f32 %v193_v9, 0.0  ;;  %v255_v33 = vmax.f32 %v233_v18, 0.0 }
  0xf4   :  { %v288_v20 = vmul.f32 %v366_v7, %v248_v11  ;;  %v324_v40 = vmul.f32 %v370_v25, %v256_v28  ;;  %p457_p3 = por %p456_p2, %p455_p1 }
  0xf5   :  { %v287_v23 = vmul.f32 %v366_v7, %v247_v16  ;;  %v323_v43 = vmul.f32 %v370_v25, %v255_v33 }
  0xf6   :  { %v290_v26 = vmax.f32 %v281_v10, %v288_v20  ;;  %p458_p4 = pnand %p457_p3, %p451_p0 }
  0xf7   :  { %v289_v30 = vmax.f32 %v280_v15, %v287_v23 }
  0xf8   :  { %v299_v35 = vmax.f32 %v290_v26, %v297_v24 }
  0xf9   :  { %v298_v37 = vmax.f32 %v289_v30, %v296_v29 }
  0xfa   :  { %v308_v38 = vmax.f32 %v299_v35, %v306_v34 }
  0xfb   :  { %v307_v41 = vmax.f32 %v298_v37, %v305_v36 }
  0xfc   :  { %v317_v44 = vmax.f32 %v308_v38, %v315_v39 }
  0xfd   :  { %v316_v45 = vmax.f32 %v307_v41, %v314_v42 }
  0xfe   :  { %v326_v46 = vmax.f32 %v317_v44, %v324_v40 }
  0xff   :  { %v325_v47 = vmax.f32 %v316_v45, %v323_v43 }
 0x100   :  { %329 = vst.msk [vmem:[#allocation2 + $0x8] sm:$0xff] %vm327_vm1, %v326_v46 }
 0x101   :  { %328 = vst.msk [vmem:[#allocation2] sm:$0xff] %vm327_vm1, %v325_v47 }
 0x102   :  { %461 = shalt.err (!%p458_p4)
}
 0x103   :  { %s462_s25 = scalar_lea.hbm %s627_s4, 256 }
 0x104   :  { %p463_p5 = scmp.ne.s32.totalorder %s627_s4, %s462_s25  ;;  %p466_p6 = scmp.lt.u32.totalorder %s462_s25, %s627_s4 }
 0x106   :  { %p468_p7 = pnand %p466_p6, %p463_p5 }
 0x108   :  { %471 = shalt.err (!%p468_p7)
}
 0x109   :  { %s475_s30 = smov 128   ;;  %s476_s1 = smov 8  }
 0x10a   :  { %341 = dma.vmem_to_hbm [thread:$0]  %s336_s22, 256, %s627_s4, [#allocation3], %s475_s30, %s475_s30, %s476_s1  }
 0x10b   :  { %472 = dma.done.wait [#allocation3], 256  }
 0x10c   :  { %473 = vsyncadd [#allocation3], 4294967040 }
 0x10d   :  { %345 = vsyncpa [#allocation3], 1 }

</bundles_post_ra>
